<compile_context>
chip_gen: v7x
topology: tpu7x:2x2x1
jax: 0.10.0
libtpu: 0.0.40
codegen_flags: <defaults>
</compile_context>

<pallas_src>
import functools

import jax
import jax.numpy as jnp
from jax.experimental import pallas as pl
from jax.experimental.pallas import tpu as pltpu


def _round_up(x, m):
    return ((x + m - 1) // m) * m


def _setup_kernel(adj_ref, x_ref, w_ref, b_ref,
                  g0_ref, a_ref, c_ref, s_ref, h0_ref, *, alpha, lambd):
    """Per row tile: linear layer + degrees + all hop-invariant row factors."""
    # h0 = linear(dropout(x)); dropout p = 0 (module default) => identity.
    # TODO(synk): non-zero dropout (training mode) is not implemented.
    h0 = jnp.dot(x_ref[...], w_ref[...],
                 preferred_element_type=jnp.float32) + b_ref[...]        # [TM, F]

    # in_degree(v) = sum_u adj[v, u];  degs = in_degree - 1 (self-loops assumed).
    in_deg = jnp.sum(adj_ref[...].astype(jnp.float32), axis=1, keepdims=True)
    d1 = jnp.maximum(in_deg, 1.0)    # = degs + 1, clamped so padded / self-loop-
    degs = d1 - 1.0                  #   free rows stay finite (no inf/nan).

    norm_lambd_1 = 1.0 / (lambd * degs + 1.0)      # (lambd*degs + 1)^-1
    norm_05 = jax.lax.rsqrt(d1)                    # (degs + 1)^-0.5
    norm05 = jnp.sqrt(d1)                          # (degs + 1)^+0.5

    a_ref[...] = (alpha * lambd) * norm_lambd_1            # per-hop matmul scale
    s_ref[...] = norm05                                    # final un-scale
    c_ref[...] = (alpha * norm_lambd_1 * norm_05) * h0     # alpha*h_initial*norm_05
    g0_ref[...] = (h0 * norm_05).astype(g0_ref.dtype)      # pre-scaled state (bf16)
    h0_ref[...] = h0                                       # the answer when k == 0


def _hop_kernel(adj_ref, g_ref, a_ref, c_ref, s_ref,
                g_new_ref, h_ref, *, alpha, tm):
    """One propagation hop for TM output rows:
       G_new = A * (adj_tile @ G_full) + (1 - alpha) * G_tile + C_tile."""
    t = pl.program_id(0)
    row0 = pl.multiple_of(t * tm, tm)

    g_full = g_ref[...]                                    # [N, F] bf16, VMEM resident
    p = jnp.dot(adj_ref[...], g_full,                      # bf16 x bf16 MXU,
                preferred_element_type=jnp.float32)        # f32 accumulate  [TM, F]

    g_tile = g_ref[pl.ds(row0, tm), :].astype(jnp.float32)
    g_new = a_ref[...] * p + (1.0 - alpha) * g_tile + c_ref[...]

    g_new_ref[...] = g_new.astype(g_new_ref.dtype)         # bf16 state for next hop
    h_ref[...] = g_new * s_ref[...]                        # h = G * norm05 (f32)


def vsgc_layer_pre(adj, x, weight, bias, *, k=1, alpha=1.0, lambd=1.0, tm=128):
    """Forward pass of VSGCLayerPre.

    adj   : [N, N]  0/1 dense adjacency (bf16 preferred), self-loops included
    x     : [N, in_dim]
    weight: [out_dim, in_dim]  (torch nn.Linear layout)
    bias  : [out_dim]
    """
    n, in_dim = x.shape
    out_dim = weight.shape[0]
    assert adj.shape == (n, n)
    alpha = float(alpha)
    lambd = float(lambd)

    # --- padding: lane-dense feature axis, sublane/tile-aligned node axis ---
    f_pad = _round_up(max(out_dim, 128), 128)
    tm = min(tm, _round_up(n, 8))
    n_pad = _round_up(n, tm)
    n_tiles = n_pad // tm

    if adj.dtype != jnp.bfloat16:
        # Callers should pass bf16 adjacency (0/1 exact) to skip this full pass.
        adj = adj.astype(jnp.bfloat16)
    if n_pad != n:
        adj = jnp.pad(adj, ((0, n_pad - n), (0, n_pad - n)))
        x = jnp.pad(x, ((0, n_pad - n), (0, 0)))
    x = x.astype(jnp.float32)

    w_t = jnp.pad(weight.T.astype(jnp.float32), ((0, 0), (0, f_pad - out_dim)))
    b2 = jnp.pad(bias.astype(jnp.float32), (0, f_pad - out_dim)).reshape(1, f_pad)

    # --- VMEM budget: double-buffered adj panels + resident G + per-tile f32 ---
    est = (2 * tm * n_pad * 2          # adj row panels (bf16, double buffered)
           + 2 * n_pad * f_pad * 2     # resident G_full (bf16)
           + 12 * tm * f_pad * 4       # per-tile f32 blocks / temporaries
           + in_dim * f_pad * 4
           + (2 << 20))                # slack
    vmem_limit = int(min(max(est, 8 * 1024 * 1024), 48 * 1024 * 1024))
    cparams = pltpu.CompilerParams(dimension_semantics=("parallel",),
                                   vmem_limit_bytes=vmem_limit)

    row_f = pl.BlockSpec((tm, f_pad), lambda t: (t, 0))
    row_1 = pl.BlockSpec((tm, 1), lambda t: (t, 0))
    adj_panel = pl.BlockSpec((tm, n_pad), lambda t: (t, 0))

    setup = pl.pallas_call(
        functools.partial(_setup_kernel, alpha=alpha, lambd=lambd),
        grid=(n_tiles,),
        in_specs=[
            adj_panel,                                        # adj rows (bf16)
            pl.BlockSpec((tm, in_dim), lambda t: (t, 0)),     # x rows
            pl.BlockSpec((in_dim, f_pad), lambda t: (0, 0)),  # W^T (resident)
            pl.BlockSpec((1, f_pad), lambda t: (0, 0)),       # bias (resident)
        ],
        out_specs=(row_f, row_1, row_f, row_1, row_f),
        out_shape=(
            jax.ShapeDtypeStruct((n_pad, f_pad), jnp.bfloat16),   # G0
            jax.ShapeDtypeStruct((n_pad, 1), jnp.float32),        # A
            jax.ShapeDtypeStruct((n_pad, f_pad), jnp.float32),    # C
            jax.ShapeDtypeStruct((n_pad, 1), jnp.float32),        # norm05
            jax.ShapeDtypeStruct((n_pad, f_pad), jnp.float32),    # h0
        ),
        compiler_params=cparams,
    )
    g, a_vec, c_arr, s_vec, h = setup(adj, x, w_t, b2)

    hop = pl.pallas_call(
        functools.partial(_hop_kernel, alpha=alpha, tm=tm),
        grid=(n_tiles,),
        in_specs=[
            adj_panel,                                        # adj rows (bf16)
            pl.BlockSpec((n_pad, f_pad), lambda t: (0, 0)),   # G_prev, full, resident
            row_1,                                            # A
            row_f,                                            # C
            row_1,                                            # norm05
        ],
        out_specs=(row_f, row_f),
        out_shape=(
            jax.ShapeDtypeStruct((n_pad, f_pad), jnp.bfloat16),   # G_new
            jax.ShapeDtypeStruct((n_pad, f_pad), jnp.float32),    # h_new
        ),
        compiler_params=cparams,
    )
    for _ in range(k):                 # k is a small static Python int
        g, h = hop(adj, g, a_vec, c_arr, s_vec)

    return h[:n, :out_dim]


def _reference(adj, x, weight, bias, *, k, alpha, lambd):
    """Pure-JAX f32 reference of the PyTorch forward (dense adjacency)."""
    h = x @ weight.T + bias
    degs = jnp.sum(adj, axis=1, keepdims=True) - 1.0
    norm_lambd_1 = (lambd * degs + 1.0) ** -1
    norm05 = (degs + 1.0) ** 0.5
    norm_05 = (degs + 1.0) ** -0.5
    h_pre = h
    h_initial = h * norm_lambd_1
    for _ in range(k):
        h = h * norm_05
        h = adj @ h
        h = h * norm_lambd_1 * norm05
        h = alpha * lambd * h + (1 - alpha) * h_pre + alpha * h_initial
        h_pre = h
    return h


if __name__ == "__main__":
    key = jax.random.PRNGKey(0)
    k_adj, k_x, k_w = jax.random.split(key, 3)

    N, IN_DIM, OUT_DIM = 256, 16, 16
    K_HOPS, ALPHA, LAMBD = 2, 0.5, 1.0

    # Random directed graph + self-loops (so degs = in_deg - 1 >= 0).
    rand = jax.random.uniform(k_adj, (N, N))
    adj_f32 = (rand < 0.25).astype(jnp.float32)
    adj_f32 = jnp.maximum(adj_f32, jnp.eye(N, dtype=jnp.float32))
    adj = adj_f32.astype(jnp.bfloat16)          # 0/1 exact in bf16; no wrapper cast

    x = jax.random.normal(k_x, (N, IN_DIM), dtype=jnp.float32)

    # reset_parameters(): xavier_uniform_ weight [out_dim, in_dim], zero bias.
    limit = (6.0 / (IN_DIM + OUT_DIM)) ** 0.5
    weight = jax.random.uniform(
        k_w, (OUT_DIM, IN_DIM), minval=-limit, maxval=limit, dtype=jnp.float32
    )
    bias = jnp.zeros((OUT_DIM,), dtype=jnp.float32)

    out = vsgc_layer_pre(adj, x, weight, bias, k=K_HOPS, alpha=ALPHA, lambd=LAMBD)
    out = jax.block_until_ready(out)

    ref = _reference(adj_f32, x, weight, bias, k=K_HOPS, alpha=ALPHA, lambd=LAMBD)
    assert out.shape == (N, OUT_DIM)
    max_err = float(jnp.max(jnp.abs(out - ref)))
    # bf16 adjacency / propagation state on the MXU path -> relaxed tolerance
    # versus the pure-f32 reference.
    assert jnp.allclose(out, ref, atol=5e-2, rtol=5e-2), (
        f"mismatch vs reference (max abs err {max_err})")

    print("KERNEL_OK")
</pallas_src>

<mosaic_0001>
module attributes {stable_mosaic.version = 11 : i64} {
  func.func @_setup_kernel(%arg0: i32, %arg1: memref<128x256xbf16, #tpu.memory_space<vmem>>, %arg2: memref<128x16xf32, #tpu.memory_space<vmem>>, %arg3: memref<16x128xf32, #tpu.memory_space<vmem>>, %arg4: memref<1x128xf32, #tpu.memory_space<vmem>>, %arg5: memref<128x128xbf16, #tpu.memory_space<vmem>>, %arg6: memref<128x1xf32, #tpu.memory_space<vmem>>, %arg7: memref<128x128xf32, #tpu.memory_space<vmem>>, %arg8: memref<128x1xf32, #tpu.memory_space<vmem>>, %arg9: memref<128x128xf32, #tpu.memory_space<vmem>>) attributes {dimension_semantics = [#tpu.dimension_semantics<parallel>], iteration_bounds = array<i64: 2>, scalar_prefetch = 0 : i64, scratch_operands = 0 : i64, tpu.core_type = #tpu.core_type<tc>, window_params = [{transform_indices = @transform_0, window_bounds = array<i64: 128, 256>}, {transform_indices = @transform_1, window_bounds = array<i64: 128, 16>}, {pipeline_mode = #tpu.pipeline_mode<synchronous>, transform_indices = @transform_2, window_bounds = array<i64: 16, 128>}, {pipeline_mode = #tpu.pipeline_mode<synchronous>, transform_indices = @transform_3, window_bounds = array<i64: 1, 128>}, {transform_indices = @transform_4, window_bounds = array<i64: 128, 128>}, {transform_indices = @transform_5, window_bounds = array<i64: 128, 1>}, {transform_indices = @transform_6, window_bounds = array<i64: 128, 128>}, {transform_indices = @transform_7, window_bounds = array<i64: 128, 1>}, {transform_indices = @transform_8, window_bounds = array<i64: 128, 128>}]} {
    %c0 = arith.constant 0 : index
    %c0_0 = arith.constant 0 : index
    %0 = vector.load %arg2[%c0, %c0_0] : memref<128x16xf32, #tpu.memory_space<vmem>>, vector<128x16xf32>
    %c0_1 = arith.constant 0 : index
    %c0_2 = arith.constant 0 : index
    %1 = vector.load %arg3[%c0_1, %c0_2] : memref<16x128xf32, #tpu.memory_space<vmem>>, vector<16x128xf32>
    %cst = arith.constant dense<0.000000e+00> : vector<128x128xf32>
    %2 = tpu.matmul %0, %1, %cst {dimension_numbers = #tpu.dot_dimension_numbers<[1], [0], [0], [1], [0, 0, 1, 1], [], []>} : vector<128x16xf32>, vector<16x128xf32>, vector<128x128xf32> -> vector<128x128xf32>
    %c0_3 = arith.constant 0 : index
    %c0_4 = arith.constant 0 : index
    %3 = vector.load %arg4[%c0_3, %c0_4] : memref<1x128xf32, #tpu.memory_space<vmem>>, vector<1x128xf32>
    %4 = vector.broadcast %3 : vector<1x128xf32> to vector<128x128xf32>
    %5 = arith.addf %2, %4 : vector<128x128xf32>
    %c0_5 = arith.constant 0 : index
    %c0_6 = arith.constant 0 : index
    %6 = vector.load %arg1[%c0_5, %c0_6] : memref<128x256xbf16, #tpu.memory_space<vmem>>, vector<128x256xbf16>
    %7 = arith.extf %6 : vector<128x256xbf16> to vector<128x256xf32>
    %cst_7 = arith.constant dense<0.000000e+00> : vector<128xf32>
    %8 = vector.multi_reduction <add>, %7, %cst_7 [1] : vector<128x256xf32> to vector<128xf32>
    %9 = vector.shape_cast %8 : vector<128xf32> to vector<128x1xf32>
    %cst_8 = arith.constant 1.000000e+00 : f32
    %10 = vector.broadcast %cst_8 : f32 to vector<128x1xf32>
    %11 = arith.maximumf %9, %10 : vector<128x1xf32>
    %cst_9 = arith.constant 1.000000e+00 : f32
    %12 = vector.broadcast %cst_9 : f32 to vector<128x1xf32>
    %13 = arith.subf %11, %12 : vector<128x1xf32>
    %cst_10 = arith.constant 1.000000e+00 : f32
    %14 = vector.broadcast %cst_10 : f32 to vector<128x1xf32>
    %15 = arith.mulf %14, %13 : vector<128x1xf32>
    %cst_11 = arith.constant 1.000000e+00 : f32
    %16 = vector.broadcast %cst_11 : f32 to vector<128x1xf32>
    %17 = arith.addf %15, %16 : vector<128x1xf32>
    %cst_12 = arith.constant 1.000000e+00 : f32
    %18 = vector.broadcast %cst_12 : f32 to vector<128x1xf32>
    %19 = arith.divf %18, %17 : vector<128x1xf32>
    %20 = math.rsqrt %11 : vector<128x1xf32>
    %21 = math.sqrt %11 : vector<128x1xf32>
    %cst_13 = arith.constant 5.000000e-01 : f32
    %22 = vector.broadcast %cst_13 : f32 to vector<128x1xf32>
    %23 = arith.mulf %22, %19 : vector<128x1xf32>
    %c0_14 = arith.constant 0 : index
    %c0_15 = arith.constant 0 : index
    %24 = vector.load %arg6[%c0_14, %c0_15] : memref<128x1xf32, #tpu.memory_space<vmem>>, vector<128x1xf32>
    tpu.vector_store %arg6[%c0_14, %c0_15], %23 {strides = array<i32>} : memref<128x1xf32, #tpu.memory_space<vmem>>, vector<128x1xf32>,
    %c0_16 = arith.constant 0 : index
    %c0_17 = arith.constant 0 : index
    %25 = vector.load %arg8[%c0_16, %c0_17] : memref<128x1xf32, #tpu.memory_space<vmem>>, vector<128x1xf32>
    tpu.vector_store %arg8[%c0_16, %c0_17], %21 {strides = array<i32>} : memref<128x1xf32, #tpu.memory_space<vmem>>, vector<128x1xf32>,
    %cst_18 = arith.constant 5.000000e-01 : f32
    %26 = vector.broadcast %cst_18 : f32 to vector<128x1xf32>
    %27 = arith.mulf %26, %19 : vector<128x1xf32>
    %28 = arith.mulf %27, %20 : vector<128x1xf32>
    %29 = vector.broadcast %28 : vector<128x1xf32> to vector<128x128xf32>
    %30 = arith.mulf %29, %5 : vector<128x128xf32>
    %c0_19 = arith.constant 0 : index
    %c0_20 = arith.constant 0 : index
    %31 = vector.load %arg7[%c0_19, %c0_20] : memref<128x128xf32, #tpu.memory_space<vmem>>, vector<128x128xf32>
    tpu.vector_store %arg7[%c0_19, %c0_20], %30 {strides = array<i32>} : memref<128x128xf32, #tpu.memory_space<vmem>>, vector<128x128xf32>,
    %32 = vector.broadcast %20 : vector<128x1xf32> to vector<128x128xf32>
    %33 = arith.mulf %5, %32 : vector<128x128xf32>
    %34 = arith.truncf %33 : vector<128x128xf32> to vector<128x128xbf16>
    %c0_21 = arith.constant 0 : index
    %c0_22 = arith.constant 0 : index
    %35 = vector.load %arg5[%c0_21, %c0_22] : memref<128x128xbf16, #tpu.memory_space<vmem>>, vector<128x128xbf16>
    tpu.vector_store %arg5[%c0_21, %c0_22], %34 {strides = array<i32>} : memref<128x128xbf16, #tpu.memory_space<vmem>>, vector<128x128xbf16>,
    %c0_23 = arith.constant 0 : index
    %c0_24 = arith.constant 0 : index
    %36 = vector.load %arg9[%c0_23, %c0_24] : memref<128x128xf32, #tpu.memory_space<vmem>>, vector<128x128xf32>
    tpu.vector_store %arg9[%c0_23, %c0_24], %5 {strides = array<i32>} : memref<128x128xf32, #tpu.memory_space<vmem>>, vector<128x128xf32>,
    return
  }
  func.func @transform_0(%arg0: i32) -> (i32, i32) {
    %c0_i32 = arith.constant 0 : i32
    %c0_i32_0 = arith.constant 0 : i32
    return %arg0, %c0_i32 : i32, i32
  }
  func.func @transform_1(%arg0: i32) -> (i32, i32) {
    %c0_i32 = arith.constant 0 : i32
    %c0_i32_0 = arith.constant 0 : i32
    return %arg0, %c0_i32 : i32, i32
  }
  func.func @transform_2(%arg0: i32) -> (i32, i32) {
    %c0_i32 = arith.constant 0 : i32
    %c0_i32_0 = arith.constant 0 : i32
    %c0_i32_1 = arith.constant 0 : i32
    return %c0_i32, %c0_i32_0 : i32, i32
  }
  func.func @transform_3(%arg0: i32) -> (i32, i32) {
    %c0_i32 = arith.constant 0 : i32
    %c0_i32_0 = arith.constant 0 : i32
    %c0_i32_1 = arith.constant 0 : i32
    return %c0_i32, %c0_i32_0 : i32, i32
  }
  func.func @transform_4(%arg0: i32) -> (i32, i32) {
    %c0_i32 = arith.constant 0 : i32
    %c0_i32_0 = arith.constant 0 : i32
    return %arg0, %c0_i32 : i32, i32
  }
  func.func @transform_5(%arg0: i32) -> (i32, i32) {
    %c0_i32 = arith.constant 0 : i32
    %c0_i32_0 = arith.constant 0 : i32
    return %arg0, %c0_i32 : i32, i32
  }
  func.func @transform_6(%arg0: i32) -> (i32, i32) {
    %c0_i32 = arith.constant 0 : i32
    %c0_i32_0 = arith.constant 0 : i32
    return %arg0, %c0_i32 : i32, i32
  }
  func.func @transform_7(%arg0: i32) -> (i32, i32) {
    %c0_i32 = arith.constant 0 : i32
    %c0_i32_0 = arith.constant 0 : i32
    return %arg0, %c0_i32 : i32, i32
  }
  func.func @transform_8(%arg0: i32) -> (i32, i32) {
    %c0_i32 = arith.constant 0 : i32
    %c0_i32_0 = arith.constant 0 : i32
    return %arg0, %c0_i32 : i32, i32
  }
}

</mosaic_0001>

<bundles_post_ra>
// kernel: tpu_custom_call.1
= control target key start
LH: loop header
LB: loop body
LE: loop exit
PB: predicated region body
PF: predicated region fallthrough
CT: control target
= control target key end

     0   :  { %s2584_s0 = inlined_call_operand.vmem [shape: bf16[256,256], index: 0, kind: input, shape index: {}]   ;;  %s2585_s1 = inlined_call_operand.vmem [shape: f32[256,16], index: 1, kind: input, shape index: {}]   ;;  %s2586_s2 = inlined_call_operand.vmem [shape: f32[16,128], index: 2, kind: input, shape index: {}]   ;;  %s2587_s3 = inlined_call_operand.vmem [shape: f32[1,128], index: 3, kind: input, shape index: {}]   ;;  %s2588_s4 = inlined_call_operand.hbm [shape: bf16[256,128], index: 4, kind: output, shape index: {0}]   ;;  %s2589_s5 = inlined_call_operand.vmem [shape: f32[256,1], index: 5, kind: output, shape index: {1}]   ;;  %s2590_s6 = inlined_call_operand.hbm [shape: f32[256,128], index: 6, kind: output, shape index: {2}]   ;;  %s2591_s7 = inlined_call_operand.vmem [shape: f32[256,1], index: 7, kind: output, shape index: {3}]   ;;  %s2592_s8 = inlined_call_operand.hbm [shape: f32[256,128], index: 8, kind: output, shape index: {4}]  }
   0x1   :  { %2594 = sst [smem:[#allocation9_spill]] %s2584_s0 }
   0x2   :  { %2595 = sst [smem:[#allocation10_spill]] %s2585_s1 }
   0x3   :  { %2596 = sst [smem:[#allocation11_spill]] %s2586_s2 }
   0x4   :  { %14 = vsyncpa [#allocation3], 0 }
   0x5   :  { %16 = vsyncpa [#allocation3 + $0x1], 0 }
   0x6   :  { %17 = vsyncpa [#allocation5], 0 }
   0x7   :  { %19 = vsyncpa [#allocation5 + $0x1], 0  ;;  %s1857_s27 = smov 0   ;;  %s1859_s28 = smov 0  }
   0x8   :  { %s1861_s29 = smov 0   ;;  %s1863_s30 = smov 0  }
   0x9 LB: > { %s1878_s9 = sadd.s32 4294967295, %s1803_s30   ;;  %s2593_s10 = sadd.s32 4294967294, %s1803_s30   ;;  %s1803_s30 = sphi %s1863_s30, %s2607_s30   ;;  %s1799_s29 = sphi %s1861_s29, %s2606_s29   ;;  %s1795_s28 = sphi %s1859_s28, %s2605_s28   ;;  %s1791_s27 = sphi %s1857_s27, %s2604_s27  }
   0xa   : > { %s1882_s11 = sadd.s32 1, %s1803_s30   ;;  %s126_s12 = sadd.s32 1, %s1799_s29 }
   0xb   : > { %s123_s13 = ssub.s32 %s1803_s30, %s1882_s11  ;;  %p136_p0 = scmp.ne.s32.totalorder %s1799_s29, %s1795_s28 }
   0xc   : > { %p124_p1 = scmp.eq.s32.totalorder %s123_s13, 0  ;;  %p137_p2 = scmp.eq.s32.totalorder %s1878_s9, 1 }
   0xd   : > { %p142_p3 = scmp.ne.s32.totalorder %s1795_s28, %s1791_s27  ;;  %p143_p4 = scmp.eq.s32.totalorder %s2593_s10, 1 }
   0xe   : > { %s1895_s14 = scalar_select %p124_p1, %s1799_s29, %s126_s12  }
   0xf   : > { %p1897_p5 = por %p137_p2, %p136_p0  ;;  %p1901_p6 = por %p143_p4, %p142_p3 }
  0x10   : > { %p1372_p7 = scmp.ge.s32.totalorder %s1803_s30, 1  ;;  %p290_p8 = scmp.lt.s32.totalorder %s1803_s30, 3 }
  0x12   : > { %p291_p9 = pnand %p1372_p7, %p290_p8 }
  0x13   : > { %s2599_s2 = sld [smem:[#allocation11_spill]] (!%p291_p9)  ;;  %s1376_s21 = sshll.u32 (!%p291_p9), %s1878_s9, 4  ;;  %vm403_vm0 = vcmask (!%p291_p9), 130048   ;;  %vm917_vm1 = vcmask (!%p291_p9), 7168  }
  0x14   : > { %294 = sbr.rel (%p291_p9) target bundleno = 333 (0x14d), region = 36  ;;  %p351_p10 = scmp.lt.s32.totalorder (!%p291_p9), %s1376_s21, 31 }
  0x15   : > { %s2600_s1 = sld [smem:[#allocation10_spill]] (!%p291_p9)  ;;  %s2601_s0 = sld [smem:[#allocation9_spill]] (!%p291_p9) }
  0x16   : > { %s1463_s20 = sshll.u32 (!%p291_p9), %s1878_s9, 11  ;;  %s1462_s26 = sshll.u32 (!%p291_p9), %s1878_s9, 10 }
  0x17   : > { %s2475_s10 = scalar_lea.hbm (!%p291_p9), %s2588_s4, %s1462_s26 }
  0x19   : > { %v394_v0 = vld [vmem:[%s2599_s2] sm:$0xff] (!%p291_p9)  ;;  %v395_v1 = vld [vmem:[%s2599_s2 + $0x8] sm:$0xff] (!%p291_p9) }
  0x1a   : > { %v1558_v2 = vpack.c.bf16 (!%p291_p9), %v395_v1, %v394_v0 }
  0x1b   : > { %s2609_s21 = smov (!%p351_p10, %s1376_s21), 31 }
  0x1c   : > { %1559 = vmatprep.subr.bf16.mxu0 %v1558_v2  ;;  %1562 = vmatprep.subr.bf16.mxu1 %v1558_v2  ;;  %s1914_s22 = sshll.u32 %s2609_s21, 3 }
  0x1d   : > { %1561 = vmatpush3.bf16.msra.mxu0 %v1558_v2  ;;  %1563 = vmatpush3.bf16.msra.mxu1 %v1558_v2  ;;  %s1920_s25 = scalar_lea.vmem %s2600_s1, %s1914_s22  ;;  %s1936_s13 = scalar_lea.vmem %s2601_s0, %s1914_s22 }
  0x1e   : > { %v378_v3 = vld [vmem:[%s1920_s25] sm:$0xff]  ;;  %v379_v5 = vld [vmem:[%s1920_s25 + $0x8] sm:$0xff]  ;;  %v380_v7 = vld [vmem:[%s1920_s25 + $0x10] sm:$0xff]  ;;  %s2020_s19 = scalar_lea.vmem %s2591_s7, %s1914_s22  ;;  %s2089_s23 = scalar_lea.vmem %s2589_s5, %s1914_s22 }
  0x1f   : > { %v386_v4 = vld [vmem:[%s1920_s25 + $0x40] sm:$0xff]  ;;  %1534 = vmatprep.mubr.msk.f32.mxu0 %vm403_vm0, %v378_v3  ;;  %v387_v6 = vld [vmem:[%s1920_s25 + $0x48] sm:$0xff]  ;;  %v388_v8 = vld [vmem:[%s1920_s25 + $0x50] sm:$0xff]  ;;  %s2303_s22 = sand.u32 1, %s1795_s28   ;;  %s1805_s0 = smov [#allocation4]  }
  0x20   : > { %1546 = vmatprep.mubr.msk.f32.mxu1 %vm403_vm0, %v386_v4  ;;  %1535 = vmatmul.mubr.msk.f32.vlgmr.msra.gmra.mrb[0].mxu0 %vm403_vm0, %v379_v5  ;;  %v381_v9 = vld [vmem:[%s1920_s25 + $0x18] sm:$0xff]  ;;  %v382_v11 = vld [vmem:[%s1920_s25 + $0x20] sm:$0xff]  ;;  %v599_v13 = vld [vmem:[%s1936_s13 + $0x10] sm:$0xff]  ;;  %s1374_s24 = sshll.u32 %s2303_s22, 7  ;;  %s1373_s12 = sshll.u32 %s2303_s22, 6 }
  0x21   : > { %1547 = vmatmul.mubr.msk.f32.vlgmr.msra.gmra.mrb[0].mxu1 %vm403_vm0, %v387_v6  ;;  %1537 = vmatprep.mubr.msk.f32.mxu0 %vm403_vm0, %v380_v7  ;;  %v389_v10 = vld [vmem:[%s1920_s25 + $0x58] sm:$0xff]  ;;  %v390_v12 = vld [vmem:[%s1920_s25 + $0x60] sm:$0xff]  ;;  %v617_v15 = vunpack.c.l.bf16 %v599_v13  ;;  %v618_v16 = vunpack.c.h.bf16 %v599_v13  ;;  %v598_v20 = vld [vmem:[%s1936_s13 + $0x8] sm:$0xff]  ;;  %s2374_s17 = scalar_lea.vmem [#allocation4], %s1374_s24  ;;  %s2394_s18 = scalar_lea.vmem [#allocation2], %s1373_s12 }
  0x22   : > { %1549 = vmatprep.mubr.msk.f32.mxu1 %vm403_vm0, %v388_v8  ;;  %v597_v14 = vld [vmem:[%s1936_s13] sm:$0xff]  ;;  %v600_v19 = vld [vmem:[%s1936_s13 + $0x18] sm:$0xff]  ;;  %v383_v21 = vld [vmem:[%s1920_s25 + $0x28] sm:$0xff]  ;;  %v615_v29 = vunpack.c.l.bf16 %v598_v20  ;;  %v616_v30 = vunpack.c.h.bf16 %v598_v20  ;;  %s1164_s21 = sshll.u32 %s2374_s17, 4  ;;  %s1144_s12 = sshll.u32 %s2394_s18, 4  ;;  %s2445_s21 = int_to_ptr.vmem [resolvable:$true] %s1164_s21  ;;  %s2479_s12 = int_to_ptr.vmem [resolvable:$true] %s1144_s12 }
  0x23   : > { %v613_v17 = vunpack.c.l.bf16 %v597_v14  ;;  %v614_v18 = vunpack.c.h.bf16 %v597_v14  ;;  %v391_v22 = vld [vmem:[%s1920_s25 + $0x68] sm:$0xff]  ;;  %v619_v23 = vunpack.c.l.bf16 %v600_v19  ;;  %v620_v24 = vunpack.c.h.bf16 %v600_v19  ;;  %v384_v25 = vld [vmem:[%s1920_s25 + $0x30] sm:$0xff]  ;;  %v601_v32 = vld [vmem:[%s1936_s13 + $0x20] sm:$0xff]  ;;  %s1685_s1 = sshll.u32 %s1805_s0, 4  ;;  %s1686_s1 = int_to_ptr.vmem [resolvable:$false] %s1685_s1 }
  0x24   : > { %1538 = vmatmul.mubr.msk.f32.gmra.mrb[2].mxu0 %vm403_vm0, %v381_v9  ;;  %v392_v26 = vld [vmem:[%s1920_s25 + $0x70] sm:$0xff]  ;;  %v651_v27 = vadd.f32 %v618_v16, %v617_v15  ;;  %v602_v31 = vld [vmem:[%s1936_s13 + $0x28] sm:$0xff]  ;;  %v385_v33 = vld [vmem:[%s1920_s25 + $0x38] sm:$0xff]  ;;  %v648_v38 = vadd.f32 %v616_v30, %v615_v29  ;;  %v621_v39 = vunpack.c.l.bf16 %v601_v32  ;;  %v622_v40 = vunpack.c.h.bf16 %v601_v32  ;;  %s1687_s26 = scalar_lea.vmem %s1686_s1, 4096  ;;  %p1688_p0 = scmp.lt.s32.totalorder %s2445_s21, %s1686_s1 }
  0x25   : > { %1550 = vmatmul.mubr.msk.f32.gmra.mrb[2].mxu1 %vm403_vm0, %v389_v10  ;;  %1540 = vmatprep.mubr.msk.f32.mxu0 %vm403_vm0, %v382_v11  ;;  %v645_v28 = vadd.f32 %v614_v18, %v613_v17  ;;  %v393_v34 = vld [vmem:[%s1920_s25 + $0x78] sm:$0xff]  ;;  %v623_v35 = vunpack.c.l.bf16 %v602_v31  ;;  %v624_v36 = vunpack.c.h.bf16 %v602_v31  ;;  %v654_v37 = vadd.f32 %v620_v24, %v619_v23  ;;  %v603_v42 = vld [vmem:[%s1936_s13 + $0x30] sm:$0xff]  ;;  %v606_v49 = vld [vmem:[%s1936_s13 + $0x48] sm:$0xff] }
  0x26   : > { %1552 = vmatprep.mubr.msk.f32.mxu1 %vm403_vm0, %v390_v12  ;;  %652 = vadd.xlane.f32.xlu1 %v651_v27  ;;  %v604_v41 = vld [vmem:[%s1936_s13 + $0x38] sm:$0xff]  ;;  %v657_v45 = vadd.f32 %v622_v40, %v621_v39  ;;  %v625_v47 = vunpack.c.l.bf16 %v603_v42  ;;  %v626_v48 = vunpack.c.h.bf16 %v603_v42  ;;  %v605_v50 = vld [vmem:[%s1936_s13 + $0x40] sm:$0xff]  ;;  %v631_v51 = vunpack.c.l.bf16 %v606_v49  ;;  %v607_v58 = vld [vmem:[%s1936_s13 + $0x50] sm:$0xff] }
  0x27   : > { %646 = vadd.xlane.f32.xlu0 %v645_v28  ;;  %v660_v43 = vadd.f32 %v624_v36, %v623_v35  ;;  %v627_v44 = vunpack.c.l.bf16 %v604_v41  ;;  %v628_v46 = vunpack.c.h.bf16 %v604_v41  ;;  %v632_v52 = vunpack.c.h.bf16 %v606_v49  ;;  %v608_v57 = vld [vmem:[%s1936_s13 + $0x58] sm:$0xff]  ;;  %v610_v1 = vld [vmem:[%s1936_s13 + $0x68] sm:$0xff]  ;;  %v609_v2 = vld [vmem:[%s1936_s13 + $0x60] sm:$0xff] }
  0x28   : > { %1541 = vmatmul.mubr.msk.f32.gmra.mrb[4].mxu0 %vm403_vm0, %v383_v21  ;;  %v663_v54 = vadd.f32 %v626_v48, %v625_v47  ;;  %v629_v55 = vunpack.c.l.bf16 %v605_v50  ;;  %v630_v56 = vunpack.c.h.bf16 %v605_v50  ;;  %v635_v60 = vunpack.c.l.bf16 %v608_v57  ;;  %v612_v9 = vld [vmem:[%s1936_s13 + $0x78] sm:$0xff]  ;;  %v611_v10 = vld [vmem:[%s1936_s13 + $0x70] sm:$0xff]  ;;  %s2357_s13 = scalar_lea.vmem [#allocation6], %s1374_s24 }
  0x29   : > { %1553 = vmatmul.mubr.msk.f32.gmra.mrb[4].mxu1 %vm403_vm0, %v391_v22  ;;  %1543 = vmatprep.mubr.msk.f32.mxu0 %vm403_vm0, %v384_v25  ;;  %v666_v53 = vadd.f32 %v628_v46, %v627_v44  ;;  %v672_v59 = vadd.f32 %v632_v52, %v631_v51  ;;  %v636_v62 = vunpack.c.h.bf16 %v608_v57  ;;  %v633_v63 = vunpack.c.l.bf16 %v607_v58  ;;  %s1184_s24 = sshll.u32 %s2357_s13, 4  ;;  %s2481_s24 = int_to_ptr.vmem [resolvable:$true] %s1184_s24 }
  0x2a   : > { %1555 = vmatprep.mubr.msk.f32.mxu1 %vm403_vm0, %v392_v26  ;;  %655 = vadd.xlane.f32.xlu1 %v654_v37  ;;  %v669_v61 = vadd.f32 %v630_v56, %v629_v55  ;;  %v634_v0 = vunpack.c.h.bf16 %v607_v58  ;;  %v639_v3 = vunpack.c.l.bf16 %v610_v1  ;;  %v640_v4 = vunpack.c.h.bf16 %v610_v1 }
  0x2b   : > { %649 = vadd.xlane.f32.xlu0 %v648_v38  ;;  %v678_v5 = vadd.f32 %v636_v62, %v635_v60  ;;  %v637_v7 = vunpack.c.l.bf16 %v609_v2  ;;  %v638_v8 = vunpack.c.h.bf16 %v609_v2  ;;  %v643_v12 = vunpack.c.l.bf16 %v612_v9 }
  0x2c   : > { %1544 = vmatmul.mubr.msk.f32.gmra.mrb[6].mxu0 %vm403_vm0, %v385_v33  ;;  %v675_v6 = vadd.f32 %v634_v0, %v633_v63  ;;  %v684_v11 = vadd.f32 %v640_v4, %v639_v3  ;;  %v644_v14 = vunpack.c.h.bf16 %v612_v9  ;;  %v641_v15 = vunpack.c.l.bf16 %v611_v10 }
  0x2d   : > { %1556 = vmatmul.mubr.msk.f32.gmra.mrb[6].mxu1 %vm403_vm0, %v393_v34  ;;  %v681_v13 = vadd.f32 %v638_v8, %v637_v7  ;;  %v642_v16 = vunpack.c.h.bf16 %v611_v10 }
  0x2e   : > { %661 = vadd.xlane.f32.xlu1 %v660_v43  ;;  %v690_v17 = vadd.f32 %v644_v14, %v643_v12 }
  0x2f   : > { %658 = vadd.xlane.f32.xlu0 %v657_v45  ;;  %v687_v18 = vadd.f32 %v642_v16, %v641_v15 }
  0x32   : > { %667 = vadd.xlane.f32.xlu1 %v666_v53 }
  0x33   : > { %664 = vadd.xlane.f32.xlu0 %v663_v54 }
  0x36   : > { %673 = vadd.xlane.f32.xlu1 %v672_v59 }
  0x37   : > { %670 = vadd.xlane.f32.xlu0 %v669_v61 }
  0x3a   : > { %679 = vadd.xlane.f32.xlu1 %v678_v5 }
  0x3b   : > { %676 = vadd.xlane.f32.xlu0 %v675_v6 }
  0x3e   : > { %685 = vadd.xlane.f32.xlu1 %v684_v11 }
  0x3f   : > { %682 = vadd.xlane.f32.xlu0 %v681_v13 }
  0x42   : > { %691 = vadd.xlane.f32.xlu1 %v690_v17 }
  0x43   : > { %688 = vadd.xlane.f32.xlu0 %v687_v18 }
  0xb3   : > { %v653_v19 = vpop.xlane.xlu1 %652 }
  0xb4   : > { %v647_v20 = vpop.xlane.xlu0 %646  ;;  %v695_v21 = vmax.f32 %v653_v19, 1.0 }
  0xb5   : > { %v1976_v22 = vmax.f32 %v647_v20, 1.0 }
  0xb6   : > { %1617 = vrsqrt.f32 %v695_v21  ;;  %v1404_v28 = vadd.f32 -1.0, %v695_v21  ;;  %vm805_vm2 = vcmp.eq.f32.partialorder %v695_v21, inf  ;;  %vm807_vm3 = vcmp.eq.f32.partialorder %v695_v21, 0.0 }
  0xb7   : > { %1619 = vrsqrt.f32 %v1976_v22  ;;  %v656_v23 = vpop.xlane.xlu1 %655  ;;  %v1402_v27 = vadd.f32 -1.0, %v1976_v22  ;;  %v808_v29 = vand.u32 2147483648, %v695_v21  ;;  %vm791_vm4 = vcmp.eq.f32.partialorder %v1976_v22, inf }
  0xb8   : > { %v650_v24 = vpop.xlane.xlu0 %649  ;;  %v1979_v25 = vmax.f32 %v656_v23, 1.0  ;;  %vm793_vm5 = vcmp.eq.f32.partialorder %v1976_v22, 0.0  ;;  %v794_v35 = vand.u32 2147483648, %v1976_v22  ;;  %v727_v36 = vadd.f32 1.0, %v1404_v28 }
  0xb9   : > { %v1981_v26 = vmax.f32 %v650_v24, 1.0  ;;  %v725_v34 = vadd.f32 1.0, %v1402_v27 }
  0xba   : > { %1621 = vrsqrt.f32 %v1979_v25  ;;  %vm812_vm6 = vcmp.eq.f32.partialorder %v1979_v25, inf  ;;  %vm814_vm7 = vcmp.eq.f32.partialorder %v1979_v25, 0.0  ;;  %v815_v37 = vand.u32 2147483648, %v1979_v25 }
  0xbb   : > { %1623 = vrsqrt.f32 %v1981_v26  ;;  %v662_v30 = vpop.xlane.xlu1 %661  ;;  %vm798_vm8 = vcmp.eq.f32.partialorder %v1981_v26, inf  ;;  %v1403_v38 = vadd.f32 -1.0, %v1981_v26  ;;  %vm800_vm9 = vcmp.eq.f32.partialorder %v1981_v26, 0.0 }
  0xbc   : > { %v659_v31 = vpop.xlane.xlu0 %658  ;;  %v1988_v32 = vmax.f32 %v662_v30, 1.0  ;;  %v801_v39 = vand.u32 2147483648, %v1981_v26  ;;  %v1405_v42 = vadd.f32 -1.0, %v1979_v25 }
  0xbd   : > { %v1990_v33 = vmax.f32 %v659_v31, 1.0  ;;  %v726_v50 = vadd.f32 1.0, %v1403_v38 }
  0xbe   : > { %1625 = vrsqrt.f32 %v1988_v32  ;;  %vm826_vm10 = vcmp.eq.f32.partialorder %v1988_v32, inf  ;;  %vm828_vm11 = vcmp.eq.f32.partialorder %v1988_v32, 0.0  ;;  %v829_v48 = vand.u32 2147483648, %v1988_v32 }
  0xbf   : > { %1627 = vrsqrt.f32 %v1990_v33  ;;  %v668_v40 = vpop.xlane.xlu1 %667  ;;  %vm819_vm12 = vcmp.eq.f32.partialorder %v1990_v33, inf  ;;  %vm821_vm13 = vcmp.eq.f32.partialorder %v1990_v33, 0.0  ;;  %v822_v52 = vand.u32 2147483648, %v1990_v33 }
  0xc0   : > { %v665_v41 = vpop.xlane.xlu0 %664  ;;  %v2003_v43 = vpop.eup %1617  ;;  %v2006_v44 = vmax.f32 %v668_v40, 1.0  ;;  %1629 = vrcp.f32 %v725_v34  ;;  %v2029_v55 = vadd.f32 1.0, %v1405_v42  ;;  %v1407_v59 = vadd.f32 -1.0, %v1988_v32 }
  0xc1   : > { %v2008_v45 = vmax.f32 %v665_v41, 1.0  ;;  %v2010_v46 = vpop.eup %1619  ;;  %v804_v47 = vmul.f32 %v2003_v43, %v695_v21  ;;  %1631 = vrcp.f32 %v727_v36  ;;  %v2083_v14 = vadd.f32 -1.0, %v1990_v33 }
  0xc2   : > { %v790_v49 = vmul.f32 %v2010_v46, %v1976_v22  ;;  %1633 = vrsqrt.f32 %v2006_v44  ;;  %vm840_vm14 = vcmp.eq.f32.partialorder %v2006_v44, inf  ;;  %vm842_vm15 = vcmp.eq.f32.partialorder %v2006_v44, 0.0 }
  0xc3   : > { %v806_v51 = vsel %vm805_vm2, %v695_v21, %v804_v47  ;;  %1635 = vrsqrt.f32 %v2008_v45  ;;  %v674_v53 = vpop.xlane.xlu1 %673  ;;  %v843_v2 = vand.u32 2147483648, %v2006_v44  ;;  %vm833_vm0 = vcmp.eq.f32.partialorder %v2008_v45, inf }
  0xc4   : > { %v671_v54 = vpop.xlane.xlu0 %670  ;;  %v2031_v56 = vpop.eup %1621  ;;  %v809_v57 = vsel %vm807_vm3, %v808_v29, %v806_v51  ;;  %v792_v58 = vsel %vm791_vm4, %v1976_v22, %v790_v49  ;;  %v2047_v63 = vmax.f32 %v674_v53, 1.0  ;;  %1637 = vrcp.f32 %v726_v50 }
  0xc5   : > { %v2039_v60 = vpop.eup %1623  ;;  %936 = vst.msk [vmem:[%s2020_s19 + $0x10] sm:$0xff] %vm917_vm1, %v809_v57  ;;  %v795_v61 = vsel %vm793_vm5, %v794_v35, %v792_v58  ;;  %v811_v62 = vmul.f32 %v2031_v56, %v1979_v25  ;;  %v2049_v0 = vmax.f32 %v671_v54, 1.0  ;;  %vm835_vm2 = vcmp.eq.f32.partialorder %v2008_v45, 0.0 }
  0xc6   : > { %934 = vst.msk [vmem:[%s2020_s19] sm:$0xff] %vm917_vm1, %v795_v61  ;;  %v797_v1 = vmul.f32 %v2039_v60, %v1981_v26  ;;  %1639 = vrsqrt.f32 %v2047_v63  ;;  %v836_v9 = vand.u32 2147483648, %v2008_v45  ;;  %v2080_v13 = vadd.f32 1.0, %v1407_v59 }
  0xc7   : > { %v813_v3 = vsel %vm812_vm6, %v1979_v25, %v811_v62  ;;  %v680_v4 = vpop.xlane.xlu1 %679  ;;  %1641 = vrsqrt.f32 %v2049_v0  ;;  %vm854_vm3 = vcmp.eq.f32.partialorder %v2047_v63, inf  ;;  %vm856_vm4 = vcmp.eq.f32.partialorder %v2047_v63, 0.0 }
  0xc8   : > { %v677_v5 = vpop.xlane.xlu0 %676  ;;  %v2063_v6 = vpop.eup %1625  ;;  %v816_v7 = vsel %vm814_vm7, %v815_v37, %v813_v3  ;;  %v799_v8 = vsel %vm798_vm8, %v1981_v26, %v797_v1  ;;  %v2096_v17 = vmax.f32 %v680_v4, 1.0  ;;  %v857_v21 = vand.u32 2147483648, %v2047_v63 }
  0xc9   : > { %v2072_v10 = vpop.eup %1627  ;;  %937 = vst.msk [vmem:[%s2020_s19 + $0x18] sm:$0xff] %vm917_vm1, %v816_v7  ;;  %v802_v11 = vsel %vm800_vm9, %v801_v39, %v799_v8  ;;  %v825_v12 = vmul.f32 %v2063_v6, %v1988_v32  ;;  %v2098_v18 = vmax.f32 %v677_v5, 1.0  ;;  %vm847_vm5 = vcmp.eq.f32.partialorder %v2049_v0, inf }
  0xca   : > { %v1630_v15 = vpop.eup %1629  ;;  %935 = vst.msk [vmem:[%s2020_s19 + $0x8] sm:$0xff] %vm917_vm1, %v802_v11  ;;  %v818_v16 = vmul.f32 %v2072_v10, %v1990_v33  ;;  %1643 = vrsqrt.f32 %v2096_v17  ;;  %vm849_vm6 = vcmp.eq.f32.partialorder %v2049_v0, 0.0  ;;  %v850_v31 = vand.u32 2147483648, %v2049_v0 }
  0xcb   : > { %v2100_v19 = vpop.eup %1631  ;;  %v827_v20 = vsel %vm826_vm10, %v1988_v32, %v825_v12  ;;  %v686_v22 = vpop.xlane.xlu1 %685  ;;  %v2107_v24 = vmul.f32 0.5, %v1630_v15  ;;  %1645 = vrsqrt.f32 %v2098_v18  ;;  %v1410_v34 = vadd.f32 -1.0, %v2049_v0 }
  0xcc   : > { %v683_v23 = vpop.xlane.xlu0 %682  ;;  %v2109_v25 = vpop.eup %1633  ;;  %v830_v26 = vsel %vm828_vm11, %v829_v48, %v827_v20  ;;  %v820_v27 = vsel %vm819_vm12, %v1990_v33, %v818_v16  ;;  %v1411_v33 = vadd.f32 -1.0, %v2047_v63  ;;  %vm868_vm7 = vcmp.eq.f32.partialorder %v2096_v17, inf }
  0xcd   : > { %v2120_v28 = vpop.eup %1635  ;;  %939 = vst.msk [vmem:[%s2020_s19 + $0x28] sm:$0xff] %vm917_vm1, %v830_v26  ;;  %v823_v29 = vsel %vm821_vm13, %v822_v52, %v820_v27  ;;  %v839_v30 = vmul.f32 %v2109_v25, %v2006_v44  ;;  %918 = vst.msk [vmem:[%s2089_s23] sm:$0xff] %vm917_vm1, %v2107_v24  ;;  %v2144_v36 = vmax.f32 %v686_v22, 1.0  ;;  %v2146_v37 = vmax.f32 %v683_v23, 1.0 }
  0xce   : > { %938 = vst.msk [vmem:[%s2020_s19 + $0x20] sm:$0xff] %vm917_vm1, %v823_v29  ;;  %v832_v32 = vmul.f32 %v2120_v28, %v2008_v45  ;;  %v1638_v40 = vpop.eup %1637  ;;  %vm870_vm8 = vcmp.eq.f32.partialorder %v2096_v17, 0.0  ;;  %v871_v50 = vand.u32 2147483648, %v2096_v17  ;;  %vm861_vm9 = vcmp.eq.f32.partialorder %v2098_v18, inf }
  0xcf   : > { %v841_v35 = vsel %vm840_vm14, %v2006_v44, %v839_v30  ;;  %v692_v38 = vpop.xlane.xlu1 %691  ;;  %1647 = vrsqrt.f32 %v2144_v36  ;;  %vm863_vm10 = vcmp.eq.f32.partialorder %v2098_v18, 0.0  ;;  %v864_v57 = vand.u32 2147483648, %v2098_v18 }
  0xd0   : > { %v689_v39 = vpop.xlane.xlu0 %688  ;;  %v844_v41 = vsel %vm842_vm15, %v843_v2, %v841_v35  ;;  %v834_v42 = vsel %vm833_vm0, %v2008_v45, %v832_v32  ;;  %v2154_v47 = vmax.f32 %v692_v38, 1.0  ;;  %v2156_v48 = vpop.eup %1639  ;;  %1649 = vrsqrt.f32 %v2146_v37 }
  0xd1   : > { %941 = vst.msk [vmem:[%s2020_s19 + $0x38] sm:$0xff] %vm917_vm1, %v844_v41  ;;  %v837_v49 = vsel %vm835_vm2, %v836_v9, %v834_v42  ;;  %v2164_v51 = vmax.f32 %v689_v39, 1.0  ;;  %v2166_v52 = vpop.eup %1641  ;;  %v853_v53 = vmul.f32 %v2156_v48, %v2047_v63  ;;  %vm882_vm11 = vcmp.eq.f32.partialorder %v2144_v36, inf }
  0xd2   : > { %940 = vst.msk [vmem:[%s2020_s19 + $0x30] sm:$0xff] %vm917_vm1, %v837_v49  ;;  %v846_v54 = vmul.f32 %v2166_v52, %v2049_v0  ;;  %1651 = vrsqrt.f32 %v2154_v47  ;;  %vm884_vm12 = vcmp.eq.f32.partialorder %v2144_v36, 0.0  ;;  %v885_v59 = vand.u32 2147483648, %v2144_v36 }
  0xd3   : > { %v855_v58 = vsel %vm854_vm3, %v2047_v63, %v853_v53  ;;  %vm875_vm13 = vcmp.eq.f32.partialorder %v2146_v37, inf  ;;  %v878_v61 = vand.u32 2147483648, %v2146_v37  ;;  %vm877_vm14 = vcmp.eq.f32.partialorder %v2146_v37, 0.0 }
  0xd4   : > { %v858_v62 = vsel %vm856_vm4, %v857_v21, %v855_v58  ;;  %v848_v1 = vsel %vm847_vm5, %v2049_v0, %v846_v54  ;;  %vm896_vm15 = vcmp.eq.f32.partialorder %v2154_v47, inf  ;;  %1653 = vrsqrt.f32 %v2164_v51  ;;  %v2195_v2 = vpop.eup %1643 }
  0xd5   : > { %943 = vst.msk [vmem:[%s2020_s19 + $0x48] sm:$0xff] %vm917_vm1, %v858_v62  ;;  %v851_v3 = vsel %vm849_vm6, %v850_v31, %v848_v1  ;;  %vm898_vm0 = vcmp.eq.f32.partialorder %v2154_v47, 0.0  ;;  %v899_v63 = vand.u32 2147483648, %v2154_v47  ;;  %v2203_v4 = vmul.f32 0.5, %v1638_v40  ;;  %v2210_v9 = vpop.eup %1645 }
  0xd6   : > { %942 = vst.msk [vmem:[%s2020_s19 + $0x40] sm:$0xff] %vm917_vm1, %v851_v3  ;;  %v867_v5 = vmul.f32 %v2195_v2, %v2096_v17  ;;  %vm889_vm2 = vcmp.eq.f32.partialorder %v2164_v51, inf  ;;  %v734_v7 = vadd.f32 1.0, %v1411_v33  ;;  %v733_v8 = vadd.f32 1.0, %v1410_v34 }
  0xd7   : > { %vm891_vm3 = vcmp.eq.f32.partialorder %v2164_v51, 0.0  ;;  %919 = vst.msk [vmem:[%s2089_s23 + $0x8] sm:$0xff] %vm917_vm1, %v2203_v4  ;;  %1655 = vrcp.f32 %v2029_v55  ;;  %v1413_v0 = vadd.f32 -1.0, %v2096_v17  ;;  %v2219_v11 = vmul.f32 0.5, %v2100_v19 }
  0xd8   : > { %v869_v12 = vsel %vm868_vm7, %v2096_v17, %v867_v5  ;;  %v860_v15 = vmul.f32 %v2210_v9, %v2098_v18  ;;  %1657 = vrcp.f32 %v734_v7  ;;  %v1412_v16 = vadd.f32 -1.0, %v2098_v18 }
  0xd9   : > { %v872_v20 = vsel %vm870_vm8, %v871_v50, %v869_v12  ;;  %v892_v55 = vand.u32 2147483648, %v2164_v51  ;;  %1659 = vrcp.f32 %v733_v8  ;;  %v736_v21 = vadd.f32 1.0, %v1413_v0  ;;  %920 = vst.msk [vmem:[%s2089_s23 + $0x10] sm:$0xff] %vm917_vm1, %v2219_v11  ;;  %v2233_v19 = vpop.eup %1647 }
  0xda   : > { %945 = vst.msk [vmem:[%s2020_s19 + $0x58] sm:$0xff] %vm917_vm1, %v872_v20  ;;  %v862_v22 = vsel %vm861_vm9, %v2098_v18, %v860_v15  ;;  %v735_v23 = vadd.f32 1.0, %v1412_v16  ;;  %1661 = vrcp.f32 %v2080_v13  ;;  %v1415_v17 = vadd.f32 -1.0, %v2144_v36  ;;  %v2242_v26 = vpop.eup %1649 }
  0xdb   : > { %v865_v27 = vsel %vm863_vm10, %v864_v57, %v862_v22  ;;  %v881_v29 = vmul.f32 %v2233_v19, %v2144_v36  ;;  %1663 = vrcp.f32 %v736_v21  ;;  %v729_v30 = vadd.f32 1.0, %v2083_v14 }
  0xdc   : > { %v2249_v31 = vpop.eup %1651  ;;  %944 = vst.msk [vmem:[%s2020_s19 + $0x50] sm:$0xff] %vm917_vm1, %v865_v27  ;;  %v874_v13 = vmul.f32 %v2242_v26, %v2146_v37  ;;  %1665 = vrcp.f32 %v735_v23  ;;  %v738_v32 = vadd.f32 1.0, %v1415_v17  ;;  %v1414_v18 = vadd.f32 -1.0, %v2146_v37  ;;  %v2317_v17 = vld [vmem:[%s2587_s3] ss:$0 sm:$0xff] }
  0xdd   : > { %v883_v33 = vsel %vm882_vm11, %v2144_v36, %v881_v29  ;;  %v895_v14 = vmul.f32 %v2249_v31, %v2154_v47  ;;  %1667 = vrcp.f32 %v729_v30  ;;  %v1409_v34 = vadd.f32 -1.0, %v2006_v44 }
  0xde   : > { %v2262_v35 = vpop.eup %1653  ;;  %v886_v38 = vsel %vm884_vm12, %v885_v59, %v883_v33  ;;  %v876_v39 = vsel %vm875_vm13, %v2146_v37, %v874_v13  ;;  %1669 = vrcp.f32 %v738_v32  ;;  %v737_v40 = vadd.f32 1.0, %v1414_v18 }
  0xdf   : > { %947 = vst.msk [vmem:[%s2020_s19 + $0x68] sm:$0xff] %vm917_vm1, %v886_v38  ;;  %v879_v41 = vsel %vm877_vm14, %v878_v61, %v876_v39  ;;  %v897_v44 = vsel %vm896_vm15, %v2154_v47, %v895_v14  ;;  %v888_v36 = vmul.f32 %v2262_v35, %v2164_v51  ;;  %v732_v42 = vadd.f32 1.0, %v1409_v34 }
  0xe0   : > { %946 = vst.msk [vmem:[%s2020_s19 + $0x60] sm:$0xff] %vm917_vm1, %v879_v41  ;;  %v900_v49 = vsel %vm898_vm0, %v899_v63, %v897_v44  ;;  %1671 = vrcp.f32 %v737_v40  ;;  %v1417_v50 = vadd.f32 -1.0, %v2154_v47  ;;  %v1408_v37 = vadd.f32 -1.0, %v2008_v45 }
  0xe1   : > { %v1656_v53 = vpop.eup %1655  ;;  %949 = vst.msk [vmem:[%s2020_s19 + $0x78] sm:$0xff] %vm917_vm1, %v900_v49  ;;  %v890_v54 = vsel %vm889_vm2, %v2164_v51, %v888_v36  ;;  %1673 = vrcp.f32 %v732_v42  ;;  %v1416_v57 = vadd.f32 -1.0, %v2164_v51  ;;  %v950_v27 = vmul.f32 %v2010_v46, %v2107_v24 }
  0xe2   : > { %v1658_v58 = vpop.eup %1657  ;;  %v893_v59 = vsel %vm891_vm3, %v892_v55, %v890_v54  ;;  %v904_v47 = vmul.f32 0.5, %v1656_v53  ;;  %v740_v61 = vadd.f32 1.0, %v1417_v50  ;;  %v731_v45 = vadd.f32 1.0, %v1408_v37 }
  0xe3   : > { %v1660_v62 = vpop.eup %1659  ;;  %948 = vst.msk [vmem:[%s2020_s19 + $0x70] sm:$0xff] %vm917_vm1, %v893_v59  ;;  %v910_v1 = vmul.f32 0.5, %v1658_v58  ;;  %v739_v0 = vadd.f32 1.0, %v1416_v57  ;;  %v951_v30 = vmul.f32 %v2039_v60, %v2203_v4  ;;  %v2327_v18 = vmul.f32 %v2003_v43, %v2219_v11  ;;  %s2464_s19 = scalar_lea.hbm %s2592_s8, %s1463_s20 }
  0xe4   : > { %v1662_v3 = vpop.eup %1661  ;;  %v909_v63 = vmul.f32 0.5, %v1660_v62  ;;  %921 = vst.msk [vmem:[%s2089_s23 + $0x18] sm:$0xff] %vm917_vm1, %v904_v47  ;;  %1675 = vrcp.f32 %v740_v61  ;;  %v953_v32 = vmul.f32 %v2031_v56, %v904_v47 }
  0xe5   : > { %v1664_v5 = vpop.eup %1663  ;;  %927 = vst.msk [vmem:[%s2089_s23 + $0x48] sm:$0xff] %vm917_vm1, %v910_v1  ;;  %v906_v51 = vmul.f32 0.5, %v1662_v3  ;;  %1677 = vrcp.f32 %v731_v45  ;;  %v959_v13 = vmul.f32 %v2156_v48, %v910_v1 }
  0xe6   : > { %v1666_v7 = vpop.eup %1665  ;;  %926 = vst.msk [vmem:[%s2089_s23 + $0x40] sm:$0xff] %vm917_vm1, %v909_v63  ;;  %v912_v8 = vmul.f32 0.5, %v1664_v5  ;;  %1679 = vrcp.f32 %v739_v0  ;;  %v958_v24 = vmul.f32 %v2166_v52, %v909_v63 }
  0xe7   : > { %v1668_v12 = vpop.eup %1667  ;;  %v911_v15 = vmul.f32 0.5, %v1666_v7  ;;  %923 = vst.msk [vmem:[%s2089_s23 + $0x28] sm:$0xff] %vm917_vm1, %v906_v51  ;;  %v2335_v39 = vmul.f32 %v2063_v6, %v906_v51 }
  0xe8   : > { %v1670_v16 = vpop.eup %1669  ;;  %929 = vst.msk [vmem:[%s2089_s23 + $0x58] sm:$0xff] %vm917_vm1, %v912_v8  ;;  %v905_v20 = vmul.f32 0.5, %v1668_v12  ;;  %v961_v38 = vmul.f32 %v2195_v2, %v912_v8 }
  0xe9   : > { %928 = vst.msk [vmem:[%s2089_s23 + $0x50] sm:$0xff] %vm917_vm1, %v911_v15  ;;  %v914_v55 = vmul.f32 0.5, %v1670_v16  ;;  %v960_v4 = vmul.f32 %v2210_v9, %v911_v15 }
  0xea   : > { %v1672_v21 = vpop.eup %1671  ;;  %922 = vst.msk [vmem:[%s2089_s23 + $0x20] sm:$0xff] %vm917_vm1, %v905_v20  ;;  %v2342_v42 = vmul.f32 %v2072_v10, %v905_v20 }
  0xeb   : > { %v1674_v22 = vpop.eup %1673  ;;  %931 = vst.msk [vmem:[%s2089_s23 + $0x68] sm:$0xff] %vm917_vm1, %v914_v55  ;;  %v913_v23 = vmul.f32 0.5, %v1672_v21  ;;  %v2350_v53 = vmul.f32 %v2233_v19, %v914_v55 }
  0xec   : > { %v908_v29 = vmul.f32 0.5, %v1674_v22 }
  0xed   : > { %930 = vst.msk [vmem:[%s2089_s23 + $0x60] sm:$0xff] %vm917_vm1, %v913_v23  ;;  %v962_v5 = vmul.f32 %v2242_v26, %v913_v23 }
  0xee   : > { %v1676_v33 = vpop.eup %1675  ;;  %925 = vst.msk [vmem:[%s2089_s23 + $0x38] sm:$0xff] %vm917_vm1, %v908_v29  ;;  %v2382_v51 = vmul.f32 %v2109_v25, %v908_v29 }
  0xef   : > { %v1678_v11 = vpop.eup %1677  ;;  %v2344_v49 = vmul.f32 0.5, %v1676_v33 }
  0xf0   : > { %v2352_v54 = vmul.f32 0.5, %v1678_v11  ;;  %v1680_v7 = vpop.eup %1679 }
  0xf1   : > { %933 = vst.msk [vmem:[%s2089_s23 + $0x78] sm:$0xff] %vm917_vm1, %v2344_v49 }
  0xf2   : > { %924 = vst.msk [vmem:[%s2089_s23 + $0x30] sm:$0xff] %vm917_vm1, %v2352_v54 }
  0xf3   : > { %v1536_v14 = vpop.f32.mrb[0].mxu0 }
  0xf4   : > { %v1548_v34 = vpop.f32.mrb[0].mxu1  ;;  %v524_v40 = vadd.f32 %v1536_v14, %v2317_v17  ;;  %v518_v44 = vpop.f32.mrb[1].mxu0 }
  0xf5   : > { %v564_v41 = vadd.f32 %v1548_v34, %v2317_v17  ;;  %v558_v36 = vpop.f32.mrb[1].mxu1  ;;  %v519_v50 = vadd.f32 %v2317_v17, %v518_v44 }
  0xf6   : > { %v559_v37 = vadd.f32 %v2317_v17, %v558_v36  ;;  %v967_v57 = vmul.f32 %v951_v30, %v524_v40  ;;  %v999_v58 = vmul.f32 %v2039_v60, %v524_v40  ;;  %1095 = vst [vmem:[%s2357_s13 + $0x8] sm:$0xff] %v524_v40 }
  0xf7   : > { %v975_v59 = vmul.f32 %v959_v13, %v564_v41  ;;  %v1007_v47 = vmul.f32 %v2156_v48, %v564_v41  ;;  %1103 = vst [vmem:[%s2357_s13 + $0x48] sm:$0xff] %v564_v41  ;;  %v966_v61 = vmul.f32 %v950_v27, %v519_v50  ;;  %v998_v45 = vmul.f32 %v2010_v46, %v519_v50  ;;  %v1539_v1 = vpop.f32.mrb[2].mxu0 }
  0xf8   : > { %1094 = vst [vmem:[%s2357_s13] sm:$0xff] %v519_v50  ;;  %v974_v60 = vmul.f32 %v958_v24, %v559_v37  ;;  %v1006_v62 = vmul.f32 %v2166_v52, %v559_v37  ;;  %1102 = vst [vmem:[%s2357_s13 + $0x40] sm:$0xff] %v559_v37  ;;  %v1551_v3 = vpop.f32.mrb[2].mxu1  ;;  %v534_v46 = vadd.f32 %v1539_v1, %v2317_v17  ;;  %v528_v52 = vpop.f32.mrb[3].mxu0 }
  0xf9   : > { %983 = vst [vmem:[%s2374_s17 + $0x8] sm:$0xff] %v967_v57  ;;  %991 = vst [vmem:[%s2374_s17 + $0x48] sm:$0xff] %v975_v59  ;;  %v574_v48 = vadd.f32 %v1551_v3, %v2317_v17  ;;  %v568_v63 = vpop.f32.mrb[3].mxu1  ;;  %v1468_v8 = vpack.c.bf16 %v999_v58, %v998_v45  ;;  %v529_v12 = vadd.f32 %v2317_v17, %v528_v52 }
  0xfa   : > { %982 = vst [vmem:[%s2374_s17] sm:$0xff] %v966_v61  ;;  %990 = vst [vmem:[%s2374_s17 + $0x40] sm:$0xff] %v974_v60  ;;  %v1488_v0 = vpack.c.bf16 %v1007_v47, %v1006_v62  ;;  %v569_v15 = vadd.f32 %v2317_v17, %v568_v63  ;;  %v969_v16 = vmul.f32 %v953_v32, %v534_v46 }
  0xfb   : > { %v1001_v20 = vmul.f32 %v2031_v56, %v534_v46  ;;  %1097 = vst [vmem:[%s2357_s13 + $0x18] sm:$0xff] %v534_v46  ;;  %v977_v55 = vmul.f32 %v961_v38, %v574_v48  ;;  %v1009_v21 = vmul.f32 %v2195_v2, %v574_v48  ;;  %1105 = vst [vmem:[%s2357_s13 + $0x58] sm:$0xff] %v574_v48  ;;  %v1542_v2 = vpop.f32.mrb[4].mxu0 }
  0xfc   : > { %1469 = vst [vmem:[%s2394_s18] sm:$0xff] %v1468_v8   ;;  %1508 = vst [vmem:[%s2394_s18 + $0x20] sm:$0xff] %v1488_v0   ;;  %v968_v22 = vmul.f32 %v2327_v18, %v529_v12  ;;  %v1000_v23 = vmul.f32 %v2003_v43, %v529_v12  ;;  %v976_v56 = vmul.f32 %v960_v4, %v569_v15  ;;  %v1554_v29 = vpop.f32.mrb[4].mxu1  ;;  %v538_v43 = vpop.f32.mrb[5].mxu0 }
  0xfd   : > { %1096 = vst [vmem:[%s2357_s13 + $0x10] sm:$0xff] %v529_v12  ;;  %v1008_v27 = vmul.f32 %v2210_v9, %v569_v15  ;;  %1104 = vst [vmem:[%s2357_s13 + $0x50] sm:$0xff] %v569_v15  ;;  %v544_v30 = vadd.f32 %v1542_v2, %v2317_v17  ;;  %v584_v13 = vadd.f32 %v1554_v29, %v2317_v17  ;;  %v578_v32 = vpop.f32.mrb[5].mxu1  ;;  %v915_v9 = vmul.f32 0.5, %v1680_v7 }
  0xfe   : > { %985 = vst [vmem:[%s2374_s17 + $0x18] sm:$0xff] %v969_v16  ;;  %993 = vst [vmem:[%s2374_s17 + $0x58] sm:$0xff] %v977_v55  ;;  %v965_v18 = vmul.f32 %v2249_v31, %v2344_v49  ;;  %v1473_v33 = vpack.c.bf16 %v1001_v20, %v1000_v23  ;;  %v539_v34 = vadd.f32 %v2317_v17, %v538_v43 }
  0xff   : > { %984 = vst [vmem:[%s2374_s17 + $0x10] sm:$0xff] %v968_v22  ;;  %992 = vst [vmem:[%s2374_s17 + $0x50] sm:$0xff] %v976_v56  ;;  %v1493_v14 = vpack.c.bf16 %v1009_v21, %v1008_v27  ;;  %v579_v24 = vadd.f32 %v2317_v17, %v578_v32  ;;  %v971_v38 = vmul.f32 %v2335_v39, %v544_v30  ;;  %v1545_v36 = vpop.f32.mrb[6].mxu0 }
 0x100   : > { %v1003_v4 = vmul.f32 %v2063_v6, %v544_v30  ;;  %1099 = vst [vmem:[%s2357_s13 + $0x28] sm:$0xff] %v544_v30  ;;  %v979_v11 = vmul.f32 %v2350_v53, %v584_v13  ;;  %v1011_v40 = vmul.f32 %v2233_v19, %v584_v13  ;;  %1107 = vst [vmem:[%s2357_s13 + $0x68] sm:$0xff] %v584_v13  ;;  %v1557_v49 = vpop.f32.mrb[6].mxu1 }
 0x101   : > { %932 = vst.msk [vmem:[%s2089_s23 + $0x70] sm:$0xff] %vm917_vm1, %v915_v9  ;;  %1505 = vst [vmem:[%s2394_s18 + $0x8] sm:$0xff] %v1473_v33   ;;  %v970_v41 = vmul.f32 %v2342_v42, %v539_v34  ;;  %v1002_v44 = vmul.f32 %v2072_v10, %v539_v34  ;;  %v978_v6 = vmul.f32 %v962_v5, %v579_v24  ;;  %s2436_s23 = scalar_lea.hbm %s2590_s6, %s1463_s20  ;;  %v548_v42 = vpop.f32.mrb[7].mxu0  ;;  %v588_v50 = vpop.f32.mrb[7].mxu1  ;;  %s2602_s20 = sand.u32 1, %s1878_s9  }
 0x102   : > { %1509 = vst [vmem:[%s2394_s18 + $0x28] sm:$0xff] %v1493_v14   ;;  %1098 = vst [vmem:[%s2357_s13 + $0x20] sm:$0xff] %v539_v34  ;;  %v1010_v39 = vmul.f32 %v2242_v26, %v579_v24  ;;  %v554_v10 = vadd.f32 %v1545_v36, %v2317_v17  ;;  %v594_v19 = vadd.f32 %v1557_v49, %v2317_v17  ;;  %s2487_s25 = scalar_lea.sflag [#allocation5], %s2602_s20 }
 0x103   : > { %1106 = vst [vmem:[%s2357_s13 + $0x60] sm:$0xff] %v579_v24  ;;  %987 = vst [vmem:[%s2374_s17 + $0x28] sm:$0xff] %v971_v38  ;;  %v956_v26 = vmul.f32 %v2120_v28, %v2352_v54  ;;  %v964_v37 = vmul.f32 %v2262_v35, %v915_v9  ;;  %v1478_v53 = vpack.c.bf16 %v1003_v4, %v1002_v44 }
 0x104   : > { %995 = vst [vmem:[%s2374_s17 + $0x68] sm:$0xff] %v979_v11  ;;  %986 = vst [vmem:[%s2374_s17 + $0x20] sm:$0xff] %v970_v41  ;;  %v1498_v57 = vpack.c.bf16 %v1011_v40, %v1010_v39  ;;  %v549_v58 = vadd.f32 %v2317_v17, %v548_v42  ;;  %v589_v59 = vadd.f32 %v2317_v17, %v588_v50 }
 0x105   : > { %994 = vst [vmem:[%s2374_s17 + $0x60] sm:$0xff] %v978_v6  ;;  %v973_v54 = vmul.f32 %v2382_v51, %v554_v10  ;;  %v1005_v47 = vmul.f32 %v2109_v25, %v554_v10  ;;  %1101 = vst [vmem:[%s2357_s13 + $0x38] sm:$0xff] %v554_v10  ;;  %v981_v61 = vmul.f32 %v965_v18, %v594_v19 }
 0x106   : > { %v1013_v45 = vmul.f32 %v2249_v31, %v594_v19  ;;  %1109 = vst [vmem:[%s2357_s13 + $0x78] sm:$0xff] %v594_v19  ;;  %1506 = vst [vmem:[%s2394_s18 + $0x10] sm:$0xff] %v1478_v53   ;;  %v972_v17 = vmul.f32 %v956_v26, %v549_v58  ;;  %v1004_v25 = vmul.f32 %v2120_v28, %v549_v58 }
 0x107   : > { %1510 = vst [vmem:[%s2394_s18 + $0x30] sm:$0xff] %v1498_v57   ;;  %1100 = vst [vmem:[%s2357_s13 + $0x30] sm:$0xff] %v549_v58  ;;  %v980_v31 = vmul.f32 %v964_v37, %v589_v59  ;;  %v1012_v60 = vmul.f32 %v2262_v35, %v589_v59 }
 0x108   : > { %1108 = vst [vmem:[%s2357_s13 + $0x70] sm:$0xff] %v589_v59  ;;  %989 = vst [vmem:[%s2374_s17 + $0x38] sm:$0xff] %v973_v54  ;;  %v1483_v28 = vpack.c.bf16 %v1005_v47, %v1004_v25  ;;  %s1681_s13 = scalar_lea.vmem %s2445_s21, 2048 }
 0x109   : > { %997 = vst [vmem:[%s2374_s17 + $0x78] sm:$0xff] %v981_v61  ;;  %988 = vst [vmem:[%s2374_s17 + $0x30] sm:$0xff] %v972_v17  ;;  %v1503_v62 = vpack.c.bf16 %v1013_v45, %v1012_v60  ;;  %p1682_p11 = scmp.ne.s32.totalorder %s2445_s21, %s1681_s13  ;;  %p1689_p1 = scmp.lt.s32.totalorder %s1687_s26, %s1681_s13 }
 0x10a   : > { %996 = vst [vmem:[%s2374_s17 + $0x70] sm:$0xff] %v980_v31 }
 0x10b   : > { %p1683_p12 = pnand %p1682_p11, %p1897_p5  ;;  %p1690_p2 = por %p1689_p1, %p1688_p0 }
 0x10d   : > { %p1684_p13 = pneg %p1683_p12 }
 0x10f   : > { %p1691_p3 = pnand %p1690_p2, %p1684_p13 }
 0x111   : > { %1694 = shalt.err (!%p1691_p3)
}
 0x112   : > { %s1695_s9 = scalar_lea.hbm %s2436_s23, 2048  ;;  %s1699_s0 = scalar_lea.hbm %s2590_s6, 4096 }
 0x113   : > { %p1696_p4 = scmp.ne.s32.totalorder %s2436_s23, %s1695_s9  ;;  %p1700_p9 = scmp.lt.u32.totalorder %s2436_s23, %s2590_s6 }
 0x114   : > { %p1701_p10 = scmp.lt.u32.totalorder %s1699_s0, %s1695_s9  ;;  %p1703_p12 = scmp.lt.u32.totalorder %s1695_s9, %s2436_s23 }
 0x115   : > { %p1697_p7 = pnand %p1696_p4, %p1897_p5 }
 0x116   : > { %p1702_p11 = por %p1701_p10, %p1700_p9 }
 0x117   : > { %p1698_p8 = pneg %p1697_p7 }
 0x118   : > { %p1704_p13 = por %p1703_p12, %p1702_p11 }
 0x11a   : > { %p1705_p0 = pnand %p1704_p13, %p1698_p8 }
 0x11c   : > { %1708 = shalt.err (!%p1705_p0)
}
 0x11d   : > { %s1806_s13 = smov 128   ;;  %s1807_s26 = smov 8   ;;  %1507 = vst [vmem:[%s2394_s18 + $0x18] sm:$0xff] %v1483_v28   ;;  %1511 = vst [vmem:[%s2394_s18 + $0x38] sm:$0xff] %v1503_v62  }
 0x11e   : > { %1565 = dma.vmem_to_hbm [thread:$0]  (%p1897_p5), %s2445_s21, 2048, %s2436_s23, %s2487_s25, %s1806_s13, %s1806_s13, %s1807_s26  }
 0x11f   : > { %s1709_s2 = scalar_lea.vmem %s2481_s24, 2048  ;;  %s1808_s9 = smov [#allocation6]  }
 0x120   : > { %p1710_p1 = scmp.ne.s32.totalorder %s2481_s24, %s1709_s2  ;;  %s1713_s17 = sshll.u32 %s1808_s9, 4  ;;  %s1714_s17 = int_to_ptr.vmem [resolvable:$false] %s1713_s17 }
 0x121   : > { %s1715_s20 = scalar_lea.vmem %s1714_s17, 4096  ;;  %p1716_p4 = scmp.lt.s32.totalorder %s2481_s24, %s1714_s17 }
 0x122   : > { %p1711_p2 = pnand %p1710_p1, %p1897_p5  ;;  %p1717_p7 = scmp.lt.s32.totalorder %s1715_s20, %s1709_s2 }
 0x124   : > { %p1712_p3 = pneg %p1711_p2  ;;  %p1718_p8 = por %p1717_p7, %p1716_p4 }
 0x126   : > { %p1719_p9 = pnand %p1718_p8, %p1712_p3 }
 0x128   : > { %1722 = shalt.err (!%p1719_p9)
}
 0x129   : > { %s1723_s18 = scalar_lea.hbm %s2464_s19, 2048  ;;  %s1727_s0 = scalar_lea.hbm %s2592_s8, 4096 }
 0x12a   : > { %p1724_p10 = scmp.ne.s32.totalorder %s2464_s19, %s1723_s18  ;;  %p1728_p13 = scmp.lt.u32.totalorder %s2464_s19, %s2592_s8 }
 0x12b   : > { %p1729_p0 = scmp.lt.u32.totalorder %s1727_s0, %s1723_s18  ;;  %p1731_p2 = scmp.lt.u32.totalorder %s1723_s18, %s2464_s19 }
 0x12c   : > { %p1725_p11 = pnand %p1724_p10, %p1897_p5 }
 0x12d   : > { %p1730_p1 = por %p1729_p0, %p1728_p13 }
 0x12e   : > { %p1726_p12 = pneg %p1725_p11 }
 0x12f   : > { %p1732_p3 = por %p1731_p2, %p1730_p1 }
 0x131   : > { %p1733_p4 = pnand %p1732_p3, %p1726_p12 }
 0x133   : > { %1736 = shalt.err (!%p1733_p4)
}
 0x134   : > { %1566 = dma.vmem_to_hbm [thread:$0]  (%p1897_p5), %s2481_s24, 2048, %s2464_s19, %s2487_s25, %s1806_s13, %s1806_s13, %s1807_s26  }
 0x135   : > { %s1111_s2 = scalar_lea.sflag [#allocation3], %s2303_s22  ;;  %s1737_s17 = scalar_lea.vmem %s2479_s12, 1024 }
 0x136   : > { %p1738_p7 = scmp.ne.s32.totalorder %s2479_s12, %s1737_s17  ;;  %s1809_s20 = smov [#allocation2]  }
 0x137   : > { %s1741_s18 = sshll.u32 %s1809_s20, 4  ;;  %s1742_s18 = int_to_ptr.vmem [resolvable:$false] %s1741_s18 }
 0x138   : > { %p1739_p8 = pnand %p1738_p7, %p1897_p5  ;;  %s1743_s21 = scalar_lea.vmem %s1742_s18, 2048 }
 0x139   : > { %p1744_p10 = scmp.lt.s32.totalorder %s2479_s12, %s1742_s18  ;;  %p1745_p11 = scmp.lt.s32.totalorder %s1743_s21, %s1737_s17 }
 0x13a   : > { %p1740_p9 = pneg %p1739_p8 }
 0x13b   : > { %p1746_p12 = por %p1745_p11, %p1744_p10 }
 0x13d   : > { %p1747_p13 = pnand %p1746_p12, %p1740_p9 }
 0x13f   : > { %1750 = shalt.err (!%p1747_p13)
}
 0x140   : > { %s1751_s19 = scalar_lea.hbm %s2475_s10, 1024  ;;  %s1755_s13 = scalar_lea.hbm %s2588_s4, 2048 }
 0x141   : > { %p1752_p0 = scmp.ne.s32.totalorder %s2475_s10, %s1751_s19  ;;  %p1756_p3 = scmp.lt.u32.totalorder %s2475_s10, %s2588_s4 }
 0x142   : > { %p1757_p4 = scmp.lt.u32.totalorder %s1755_s13, %s1751_s19  ;;  %p1759_p8 = scmp.lt.u32.totalorder %s1751_s19, %s2475_s10 }
 0x143   : > { %p1753_p1 = pnand %p1752_p0, %p1897_p5 }
 0x144   : > { %p1758_p7 = por %p1757_p4, %p1756_p3 }
 0x145   : > { %p1754_p2 = pneg %p1753_p1 }
 0x146   : > { %p1760_p9 = por %p1759_p8, %p1758_p7 }
 0x148   : > { %p1761_p10 = pnand %p1760_p9, %p1754_p2 }
 0x14a   : > { %1764 = shalt.err (!%p1761_p10)
}
 0x14b   : > { %s1810_s0 = smov 64   ;;  %s1811_s1 = smov 4  }
 0x14c   : > { %1564 = dma.vmem_to_hbm [thread:$0]  (%p1897_p5), %s2479_s12, 1024, %s2475_s10, %s1111_s2, %s1810_s0, %s1810_s0, %s1811_s1  }
 0x14d PF: > { %p1580_p11 = scmp.ge.s32.totalorder %s1803_s30, 2  ;;  %s1199_s9 = sand.u32 1, %s1791_s27  }
 0x14e   : > { %s1200_s17 = scalar_lea.sflag [#allocation3], %s1199_s9 }
 0x14f   : > { %p1571_p12 = pnand %p1580_p11, %p1901_p6 }
 0x151   : > { %1782 = dma.done.wait (!%p1571_p12), %s1200_s17, 1024  }
 0x152   : > { %1784 = vsyncadd (!%p1571_p12), %s1200_s17, 4294966272  ;;  %s2603_s20 = sadd.s32 4294967294, %s1803_s30  }
 0x153   : > { %s1216_s18 = sand.u32 1, %s2603_s20  }
 0x154   : > { %s1217_s21 = scalar_lea.sflag [#allocation5], %s1216_s18 }
 0x155   : > { %1786 = dma.done.wait (!%p1571_p12), %s1217_s21, 4096  }
 0x156   : > { %1788 = vsyncadd (!%p1571_p12), %s1217_s21, 4294963200  ;;  %p22_p5 = scmp.ge.s32.totalorder %s1882_s11, 4   ;;  %s2604_s27 = smov %s1795_s28 }
 0x157   : > { %s2605_s28 = smov %s1799_s29  ;;  %s2606_s29 = smov %s1895_s14 }
 0x158   : > { %s2607_s30 = smov %s1882_s11  ;;  %24 = sbr.rel (!%p22_p5) target bundleno = 9 (0x9), region = 130 }
 0x15f   :  { %1239 = vsyncpa [#allocation3], 1 }
 0x160   :  { %1241 = vsyncpa [#allocation3 + $0x1], 1 }
 0x161   :  { %1242 = vsyncpa [#allocation5], 1 }
 0x162   :  { %1244 = vsyncpa [#allocation5 + $0x1], 1 }

</bundles_post_ra>
